<compile_context>
chip_gen: v5e
topology: v5e:2x2
jax: 0.10.0
libtpu: 0.0.40
codegen_flags: <defaults>
</compile_context>

<pallas_src>
import math

import jax
import jax.numpy as jnp
from jax.experimental import pallas as pl
from jax.experimental.pallas import tpu as pltpu

INPUT_SIZE = 16
OUTPUT_SIZE = 16
HIDDEN_SIZE = 32
N_LAYERS = 2
BATCH = 8


def gaussian_lstm_kernel(xe_ref, w0_ref, wrest_ref, b_ref,
                         whead_ref, bhead_ref, hc_ref,
                         zml_ref, hc_new_ref):
    H = HIDDEN_SIZE

    x = xe_ref[:, :INPUT_SIZE]            # (B, IN)
    eps = xe_ref[:, INPUT_SIZE:]          # (B, OUT)

    def lstm_step(inp, w, b, hc_layer):
        """One fused LSTMCell: gates = [inp | h_prev] @ w + b (PyTorch i,f,g,o)."""
        h_prev = hc_layer[:, :H]
        c_prev = hc_layer[:, H:]
        fused_in = jnp.concatenate([inp, h_prev], axis=1)
        gates = jnp.dot(fused_in, w, preferred_element_type=jnp.float32) + b
        # full-vreg (8,128) activations, then slice per gate
        sig = jax.nn.sigmoid(gates)
        th = jnp.tanh(gates)
        i_g = sig[:, 0 * H:1 * H]
        f_g = sig[:, 1 * H:2 * H]
        g_g = th[:, 2 * H:3 * H]
        o_g = sig[:, 3 * H:4 * H]
        c_new = f_g * c_prev + i_g * g_g
        h_new = o_g * jnp.tanh(c_new)
        return h_new, c_new

    # layer 0 (embed already folded into w0 / b[0] host-side)
    h_new, c_new = lstm_step(x, w0_ref[...], b_ref[0], hc_ref[0])
    hc_new_ref[0] = jnp.concatenate([h_new, c_new], axis=1)
    h_in = h_new

    # remaining layers
    for layer in range(1, N_LAYERS):
        h_new, c_new = lstm_step(h_in, wrest_ref[layer - 1], b_ref[layer],
                                 hc_ref[layer])
        hc_new_ref[layer] = jnp.concatenate([h_new, c_new], axis=1)
        h_in = h_new

    # fused mu|logvar head
    head = jnp.dot(h_in, whead_ref[...],
                   preferred_element_type=jnp.float32) + bhead_ref[...]
    mu = head[:, :OUTPUT_SIZE]
    lv = head[:, OUTPUT_SIZE:]

    # reparameterize: z = eps * exp(0.5 * logvar) + mu
    z = eps * jnp.exp(0.5 * lv) + mu

    # single lane-dense-ish merged store instead of three tiny ones
    zml_ref[...] = jnp.concatenate([z, mu, lv], axis=1)


def pack_params(params):
    """Host/XLA-side algebraic packing of the 10 raw parameter tensors."""
    we, be, wih, whh, bih, bhh, wmu, bmu, wlv, blv = params
    # layer 0: fold embed into the ih path, fuse ih/hh along K
    w0 = jnp.concatenate([we @ wih[0], whh[0]], axis=0)              # (IN+H, 4H)
    b0 = be @ wih[0] + bih[0] + bhh[0]                               # (1, 4H)
    # layers 1..L-1: fuse ih/hh
    wrest = jnp.stack(
        [jnp.concatenate([wih[l], whh[l]], axis=0) for l in range(1, N_LAYERS)],
        axis=0)                                                      # (L-1, 2H, 4H)
    brest = jnp.stack([bih[l] + bhh[l] for l in range(1, N_LAYERS)],
                      axis=0)                                        # (L-1, 1, 4H)
    b_all = jnp.concatenate([b0[None], brest], axis=0)               # (L, 1, 4H)
    # fused heads
    whead = jnp.concatenate([wmu, wlv], axis=1)                      # (H, 2*OUT)
    bhead = jnp.concatenate([bmu, blv], axis=1)                      # (1, 2*OUT)
    return w0, wrest, b_all, whead, bhead


def _forward_impl(x, params, h0, c0, eps):
    w0, wrest, b_all, whead, bhead = pack_params(params)
    xe = jnp.concatenate([x, eps], axis=1)                           # (B, IN+OUT)
    hc = jnp.concatenate([h0, c0], axis=2)                           # (L, B, 2H)

    vmem = pl.BlockSpec(memory_space=pltpu.MemorySpace.VMEM)
    out_shapes = (
        jax.ShapeDtypeStruct((BATCH, 3 * OUTPUT_SIZE), jnp.float32),            # z|mu|lv
        jax.ShapeDtypeStruct((N_LAYERS, BATCH, 2 * HIDDEN_SIZE), jnp.float32),  # h|c
    )
    zml, hc_new = pl.pallas_call(
        gaussian_lstm_kernel,
        out_shape=out_shapes,
        in_specs=[vmem] * 7,
        out_specs=[vmem] * 2,
        input_output_aliases={6: 1},   # hc -> hc_new (state updated in place)
    )(xe, w0, wrest, b_all, whead, bhead, hc)

    z = zml[:, :OUTPUT_SIZE]
    mu = zml[:, OUTPUT_SIZE:2 * OUTPUT_SIZE]
    logvar = zml[:, 2 * OUTPUT_SIZE:]
    h_new = hc_new[:, :, :HIDDEN_SIZE]
    c_new = hc_new[:, :, HIDDEN_SIZE:]
    return z, mu, logvar, h_new, c_new


gaussian_lstm_forward = jax.jit(_forward_impl)


def reference_forward(x, params, h0, c0, eps):
    """Pure-JAX reference mirroring the PyTorch module (unfused)."""
    we, be, wih, whh, bih, bhh, wmu, bmu, wlv, blv = params
    H = HIDDEN_SIZE
    h_in = x @ we + be
    h_list, c_list = [], []
    for l in range(N_LAYERS):
        gates = h_in @ wih[l] + bih[l] + h0[l] @ whh[l] + bhh[l]
        i_g = jax.nn.sigmoid(gates[:, 0 * H:1 * H])
        f_g = jax.nn.sigmoid(gates[:, 1 * H:2 * H])
        g_g = jnp.tanh(gates[:, 2 * H:3 * H])
        o_g = jax.nn.sigmoid(gates[:, 3 * H:4 * H])
        c = f_g * c0[l] + i_g * g_g
        h = o_g * jnp.tanh(c)
        h_list.append(h)
        c_list.append(c)
        h_in = h
    mu = h_in @ wmu + bmu
    lv = h_in @ wlv + blv
    z = eps * jnp.exp(0.5 * lv) + mu
    return z, mu, lv, jnp.stack(h_list), jnp.stack(c_list)


def init_params(key):
    """Deterministic init mirroring PyTorch's default uniform(-1/sqrt(fan_in), +)."""
    ks = jax.random.split(key, 10)

    def uni(k, shape, bound):
        return jax.random.uniform(k, shape, jnp.float32, -bound, bound)

    eb = 1.0 / math.sqrt(INPUT_SIZE)
    hb = 1.0 / math.sqrt(HIDDEN_SIZE)
    we = uni(ks[0], (INPUT_SIZE, HIDDEN_SIZE), eb)
    be = uni(ks[1], (1, HIDDEN_SIZE), eb)
    wih = uni(ks[2], (N_LAYERS, HIDDEN_SIZE, 4 * HIDDEN_SIZE), hb)
    whh = uni(ks[3], (N_LAYERS, HIDDEN_SIZE, 4 * HIDDEN_SIZE), hb)
    bih = uni(ks[4], (N_LAYERS, 1, 4 * HIDDEN_SIZE), hb)
    bhh = uni(ks[5], (N_LAYERS, 1, 4 * HIDDEN_SIZE), hb)
    wmu = uni(ks[6], (HIDDEN_SIZE, OUTPUT_SIZE), hb)
    bmu = uni(ks[7], (1, OUTPUT_SIZE), hb)
    wlv = uni(ks[8], (HIDDEN_SIZE, OUTPUT_SIZE), hb)
    blv = uni(ks[9], (1, OUTPUT_SIZE), hb)
    return (we, be, wih, whh, bih, bhh, wmu, bmu, wlv, blv)


if __name__ == "__main__":
    key = jax.random.PRNGKey(0)
    kx, kp, ke = jax.random.split(key, 3)

    x = jax.random.normal(kx, (BATCH, INPUT_SIZE), dtype=jnp.float32)
    params = init_params(kp)
    # init_hidden(): zeros, one (h, c) pair per layer
    h0 = jnp.zeros((N_LAYERS, BATCH, HIDDEN_SIZE), jnp.float32)
    c0 = jnp.zeros((N_LAYERS, BATCH, HIDDEN_SIZE), jnp.float32)
    # eps ~ N(0, 1) for reparameterization (generated host-side, consumed in-kernel)
    eps = jax.random.normal(ke, (BATCH, OUTPUT_SIZE), dtype=jnp.float32)

    z, mu, logvar, h_new, c_new = gaussian_lstm_forward(x, params, h0, c0, eps)
    jax.block_until_ready((z, mu, logvar, h_new, c_new))

    assert z.shape == (BATCH, OUTPUT_SIZE)
    assert mu.shape == (BATCH, OUTPUT_SIZE)
    assert logvar.shape == (BATCH, OUTPUT_SIZE)
    assert h_new.shape == (N_LAYERS, BATCH, HIDDEN_SIZE)
    assert c_new.shape == (N_LAYERS, BATCH, HIDDEN_SIZE)

    # correctness vs. unfused pure-JAX reference
    zr, mur, lvr, hr, cr = reference_forward(x, params, h0, c0, eps)
    for got, ref in ((z, zr), (mu, mur), (logvar, lvr), (h_new, hr), (c_new, cr)):
        assert jnp.allclose(got, ref, rtol=1e-4, atol=1e-4), "mismatch vs reference"

    print("KERNEL_OK")
</pallas_src>

<mosaic_0001>
module attributes {stable_mosaic.version = 11 : i64} {
  func.func @gaussian_lstm_kernel(%arg0: memref<8x32xf32, #tpu.memory_space<vmem>>, %arg1: memref<48x128xf32, #tpu.memory_space<vmem>>, %arg2: memref<1x64x128xf32, #tpu.memory_space<vmem>>, %arg3: memref<2x1x128xf32, #tpu.memory_space<vmem>>, %arg4: memref<32x32xf32, #tpu.memory_space<vmem>>, %arg5: memref<1x32xf32, #tpu.memory_space<vmem>>, %arg6: memref<2x8x64xf32, #tpu.memory_space<vmem>>, %arg7: memref<8x48xf32, #tpu.memory_space<vmem>>, %arg8: memref<2x8x64xf32, #tpu.memory_space<vmem>>) attributes {dimension_semantics = [], scalar_prefetch = 0 : i64, scratch_operands = 0 : i64, tpu.core_type = #tpu.core_type<tc>} {
    %c0 = arith.constant 0 : index
    %c0_0 = arith.constant 0 : index
    %0 = vector.load %arg0[%c0, %c0_0] : memref<8x32xf32, #tpu.memory_space<vmem>>, vector<8x16xf32>
    %c0_1 = arith.constant 0 : index
    %c16 = arith.constant 16 : index
    %1 = vector.load %arg0[%c0_1, %c16] : memref<8x32xf32, #tpu.memory_space<vmem>>, vector<8x16xf32>
    %c0_2 = arith.constant 0 : index
    %c0_3 = arith.constant 0 : index
    %2 = vector.load %arg1[%c0_2, %c0_3] : memref<48x128xf32, #tpu.memory_space<vmem>>, vector<48x128xf32>
    %c0_4 = arith.constant 0 : index
    %c0_5 = arith.constant 0 : index
    %c0_6 = arith.constant 0 : index
    %3 = vector.load %arg3[%c0_4, %c0_5, %c0_6] : memref<2x1x128xf32, #tpu.memory_space<vmem>>, vector<1x1x128xf32>
    %4 = vector.shape_cast %3 : vector<1x1x128xf32> to vector<1x128xf32>
    %c0_7 = arith.constant 0 : index
    %c0_8 = arith.constant 0 : index
    %c0_9 = arith.constant 0 : index
    %5 = vector.load %arg6[%c0_7, %c0_8, %c0_9] : memref<2x8x64xf32, #tpu.memory_space<vmem>>, vector<1x8x64xf32>
    %6 = vector.shape_cast %5 : vector<1x8x64xf32> to vector<8x64xf32>
    %7 = vector.extract_strided_slice %6 {offsets = [0, 0], sizes = [8, 32], strides = [1, 1]} : vector<8x64xf32> to vector<8x32xf32>
    %8 = vector.extract_strided_slice %6 {offsets = [0, 32], sizes = [8, 32], strides = [1, 1]} : vector<8x64xf32> to vector<8x32xf32>
    %9 = tpu.concatenate %0, %7 in 1 : vector<8x16xf32>, vector<8x32xf32> -> vector<8x48xf32>
    %cst = arith.constant dense<0.000000e+00> : vector<8x128xf32>
    %10 = tpu.matmul %9, %2, %cst {dimension_numbers = #tpu.dot_dimension_numbers<[1], [0], [0], [1], [0, 0, 1, 1], [], []>} : vector<8x48xf32>, vector<48x128xf32>, vector<8x128xf32> -> vector<8x128xf32>
    %11 = vector.broadcast %4 : vector<1x128xf32> to vector<8x128xf32>
    %12 = arith.addf %10, %11 : vector<8x128xf32>
    %13 = arith.negf %12 : vector<8x128xf32>
    %14 = math.exp %13 : vector<8x128xf32>
    %cst_10 = arith.constant 1.000000e+00 : f32
    %15 = vector.broadcast %cst_10 : f32 to vector<8x128xf32>
    %16 = arith.addf %15, %14 : vector<8x128xf32>
    %17 = arith.divf %15, %16 : vector<8x128xf32>
    %18 = math.tanh %12 : vector<8x128xf32>
    %19 = vector.extract_strided_slice %17 {offsets = [0, 0], sizes = [8, 32], strides = [1, 1]} : vector<8x128xf32> to vector<8x32xf32>
    %20 = vector.extract_strided_slice %17 {offsets = [0, 32], sizes = [8, 32], strides = [1, 1]} : vector<8x128xf32> to vector<8x32xf32>
    %21 = vector.extract_strided_slice %18 {offsets = [0, 64], sizes = [8, 32], strides = [1, 1]} : vector<8x128xf32> to vector<8x32xf32>
    %22 = vector.extract_strided_slice %17 {offsets = [0, 96], sizes = [8, 32], strides = [1, 1]} : vector<8x128xf32> to vector<8x32xf32>
    %23 = arith.mulf %20, %8 : vector<8x32xf32>
    %24 = arith.mulf %19, %21 : vector<8x32xf32>
    %25 = arith.addf %23, %24 : vector<8x32xf32>
    %26 = math.tanh %25 : vector<8x32xf32>
    %27 = arith.mulf %22, %26 : vector<8x32xf32>
    %28 = tpu.concatenate %27, %25 in 1 : vector<8x32xf32>, vector<8x32xf32> -> vector<8x64xf32>
    %c0_11 = arith.constant 0 : index
    %c0_12 = arith.constant 0 : index
    %c0_13 = arith.constant 0 : index
    %29 = vector.load %arg8[%c0_11, %c0_12, %c0_13] : memref<2x8x64xf32, #tpu.memory_space<vmem>>, vector<1x8x64xf32>
    %30 = vector.shape_cast %29 : vector<1x8x64xf32> to vector<8x64xf32>
    %31 = vector.shape_cast %28 : vector<8x64xf32> to vector<1x8x64xf32>
    tpu.vector_store %arg8[%c0_11, %c0_12, %c0_13], %31 {strides = array<i32>} : memref<2x8x64xf32, #tpu.memory_space<vmem>>, vector<1x8x64xf32>,
    %c0_14 = arith.constant 0 : index
    %c0_15 = arith.constant 0 : index
    %c0_16 = arith.constant 0 : index
    %32 = vector.load %arg2[%c0_14, %c0_15, %c0_16] : memref<1x64x128xf32, #tpu.memory_space<vmem>>, vector<1x64x128xf32>
    %33 = vector.shape_cast %32 : vector<1x64x128xf32> to vector<64x128xf32>
    %c1 = arith.constant 1 : index
    %c0_17 = arith.constant 0 : index
    %c0_18 = arith.constant 0 : index
    %34 = vector.load %arg3[%c1, %c0_17, %c0_18] : memref<2x1x128xf32, #tpu.memory_space<vmem>>, vector<1x1x128xf32>
    %35 = vector.shape_cast %34 : vector<1x1x128xf32> to vector<1x128xf32>
    %c1_19 = arith.constant 1 : index
    %c0_20 = arith.constant 0 : index
    %c0_21 = arith.constant 0 : index
    %36 = vector.load %arg6[%c1_19, %c0_20, %c0_21] : memref<2x8x64xf32, #tpu.memory_space<vmem>>, vector<1x8x64xf32>
    %37 = vector.shape_cast %36 : vector<1x8x64xf32> to vector<8x64xf32>
    %38 = vector.extract_strided_slice %37 {offsets = [0, 0], sizes = [8, 32], strides = [1, 1]} : vector<8x64xf32> to vector<8x32xf32>
    %39 = vector.extract_strided_slice %37 {offsets = [0, 32], sizes = [8, 32], strides = [1, 1]} : vector<8x64xf32> to vector<8x32xf32>
    %40 = tpu.concatenate %27, %38 in 1 : vector<8x32xf32>, vector<8x32xf32> -> vector<8x64xf32>
    %cst_22 = arith.constant dense<0.000000e+00> : vector<8x128xf32>
    %41 = tpu.matmul %40, %33, %cst_22 {dimension_numbers = #tpu.dot_dimension_numbers<[1], [0], [0], [1], [0, 0, 1, 1], [], []>} : vector<8x64xf32>, vector<64x128xf32>, vector<8x128xf32> -> vector<8x128xf32>
    %42 = vector.broadcast %35 : vector<1x128xf32> to vector<8x128xf32>
    %43 = arith.addf %41, %42 : vector<8x128xf32>
    %44 = arith.negf %43 : vector<8x128xf32>
    %45 = math.exp %44 : vector<8x128xf32>
    %cst_23 = arith.constant 1.000000e+00 : f32
    %46 = vector.broadcast %cst_23 : f32 to vector<8x128xf32>
    %47 = arith.addf %46, %45 : vector<8x128xf32>
    %48 = arith.divf %46, %47 : vector<8x128xf32>
    %49 = math.tanh %43 : vector<8x128xf32>
    %50 = vector.extract_strided_slice %48 {offsets = [0, 0], sizes = [8, 32], strides = [1, 1]} : vector<8x128xf32> to vector<8x32xf32>
    %51 = vector.extract_strided_slice %48 {offsets = [0, 32], sizes = [8, 32], strides = [1, 1]} : vector<8x128xf32> to vector<8x32xf32>
    %52 = vector.extract_strided_slice %49 {offsets = [0, 64], sizes = [8, 32], strides = [1, 1]} : vector<8x128xf32> to vector<8x32xf32>
    %53 = vector.extract_strided_slice %48 {offsets = [0, 96], sizes = [8, 32], strides = [1, 1]} : vector<8x128xf32> to vector<8x32xf32>
    %54 = arith.mulf %51, %39 : vector<8x32xf32>
    %55 = arith.mulf %50, %52 : vector<8x32xf32>
    %56 = arith.addf %54, %55 : vector<8x32xf32>
    %57 = math.tanh %56 : vector<8x32xf32>
    %58 = arith.mulf %53, %57 : vector<8x32xf32>
    %59 = tpu.concatenate %58, %56 in 1 : vector<8x32xf32>, vector<8x32xf32> -> vector<8x64xf32>
    %c1_24 = arith.constant 1 : index
    %c0_25 = arith.constant 0 : index
    %c0_26 = arith.constant 0 : index
    %60 = vector.load %arg8[%c1_24, %c0_25, %c0_26] : memref<2x8x64xf32, #tpu.memory_space<vmem>>, vector<1x8x64xf32>
    %61 = vector.shape_cast %60 : vector<1x8x64xf32> to vector<8x64xf32>
    %62 = vector.shape_cast %59 : vector<8x64xf32> to vector<1x8x64xf32>
    tpu.vector_store %arg8[%c1_24, %c0_25, %c0_26], %62 {strides = array<i32>} : memref<2x8x64xf32, #tpu.memory_space<vmem>>, vector<1x8x64xf32>,
    %c0_27 = arith.constant 0 : index
    %c0_28 = arith.constant 0 : index
    %63 = vector.load %arg4[%c0_27, %c0_28] : memref<32x32xf32, #tpu.memory_space<vmem>>, vector<32x32xf32>
    %cst_29 = arith.constant dense<0.000000e+00> : vector<8x32xf32>
    %64 = tpu.matmul %58, %63, %cst_29 {dimension_numbers = #tpu.dot_dimension_numbers<[1], [0], [0], [1], [0, 0, 1, 1], [], []>} : vector<8x32xf32>, vector<32x32xf32>, vector<8x32xf32> -> vector<8x32xf32>
    %c0_30 = arith.constant 0 : index
    %c0_31 = arith.constant 0 : index
    %65 = vector.load %arg5[%c0_30, %c0_31] : memref<1x32xf32, #tpu.memory_space<vmem>>, vector<1x32xf32>
    %66 = vector.broadcast %65 : vector<1x32xf32> to vector<8x32xf32>
    %67 = arith.addf %64, %66 : vector<8x32xf32>
    %68 = vector.extract_strided_slice %67 {offsets = [0, 0], sizes = [8, 16], strides = [1, 1]} : vector<8x32xf32> to vector<8x16xf32>
    %69 = vector.extract_strided_slice %67 {offsets = [0, 16], sizes = [8, 16], strides = [1, 1]} : vector<8x32xf32> to vector<8x16xf32>
    %cst_32 = arith.constant 5.000000e-01 : f32
    %70 = vector.broadcast %cst_32 : f32 to vector<8x16xf32>
    %71 = arith.mulf %70, %69 : vector<8x16xf32>
    %72 = math.exp %71 : vector<8x16xf32>
    %73 = arith.mulf %1, %72 : vector<8x16xf32>
    %74 = arith.addf %73, %68 : vector<8x16xf32>
    %75 = tpu.concatenate %74, %68, %69 in 1 : vector<8x16xf32>, vector<8x16xf32>, vector<8x16xf32> -> vector<8x48xf32>
    %c0_33 = arith.constant 0 : index
    %c0_34 = arith.constant 0 : index
    %76 = vector.load %arg7[%c0_33, %c0_34] : memref<8x48xf32, #tpu.memory_space<vmem>>, vector<8x48xf32>
    tpu.vector_store %arg7[%c0_33, %c0_34], %75 {strides = array<i32>} : memref<8x48xf32, #tpu.memory_space<vmem>>, vector<8x48xf32>,
    return
  }
}

</mosaic_0001>

<bundles_post_ra>
// kernel: _forward_impl.1
= control target key start
LH: loop header
LB: loop body
LE: loop exit
PB: predicated region body
PF: predicated region fallthrough
CT: control target
= control target key end

     0   :  { %s289_s11 = smov 16   ;;  %vm41_vm0 = vcmask 130048   ;;  %vm46_vm1 = vcmask 392192   ;;  %vm111_vm6 = vcmask 261120   ;;  %vm113_vm7 = vcmask 523264   ;;  %s446_s6 = inlined_call_operand.vmem [shape: f32[2,8,64], index: 6, kind: input, shape index: {}, may-alias: {6,8}]   ;;  %s447_s1 = inlined_call_operand.vmem [shape: f32[48,128], index: 1, kind: input, shape index: {}]   ;;  %s448_s3 = inlined_call_operand.vmem [shape: f32[2,1,128], index: 3, kind: input, shape index: {}]   ;;  %s449_s0 = inlined_call_operand.vmem [shape: f32[8,32], index: 0, kind: input, shape index: {}]   ;;  %s450_s2 = inlined_call_operand.vmem [shape: f32[1,64,128], index: 2, kind: input, shape index: {}]   ;;  %s451_s8 = inlined_call_operand.vmem [shape: f32[2,8,64], index: 8, kind: output, shape index: {1}, may-alias: {6,8}]   ;;  %s452_s4 = inlined_call_operand.vmem [shape: f32[32,32], index: 4, kind: input, shape index: {}]   ;;  %s453_s5 = inlined_call_operand.vmem [shape: f32[1,32], index: 5, kind: input, shape index: {}]   ;;  %s454_s7 = inlined_call_operand.vmem [shape: f32[8,48], index: 7, kind: output, shape index: {0}]  }
   0x1   :  { %v36_v0 = vld [vmem:[%s446_s6] sm:$0xff]  ;;  %v34_v1 = vld [vmem:[%s447_s1 + $0x28] sm:$0xff]  ;;  %v32_v3 = vld [vmem:[%s447_s1 + $0x18] sm:$0xff] }
   0x2   :  { %v33_v2 = vld [vmem:[%s447_s1 + $0x20] sm:$0xff]  ;;  %38 = vrot.lane.b32.xlu0 %v36_v0, %s289_s11  ;;  %60 = vmatpush.msra.mxu0 %v34_v1  ;;  %v31_v4 = vld [vmem:[%s447_s1 + $0x10] sm:$0xff]  ;;  %v30_v5 = vld [vmem:[%s447_s1 + $0x8] sm:$0xff] }
   0x3   :  { %v29_v6 = vld [vmem:[%s447_s1] sm:$0xff]  ;;  %s290_s1 = smov 64   ;;  %v122_v33 = vld [vmem:[%s450_s2 + $0x38] sm:$0xff]  ;;  %v121_v34 = vld [vmem:[%s450_s2 + $0x30] sm:$0xff] }
   0x4   :  { %61 = vmatpush.msra.mxu0 %v33_v2  ;;  %v363_v7 = vld [vmem:[%s449_s0] sm:$0xff]  ;;  %s291_s0 = smov 32   ;;  %146 = vmatpush.msra.mxu1 %v122_v33  ;;  %v120_v35 = vld [vmem:[%s450_s2 + $0x28] sm:$0xff]  ;;  %v118_v40 = vld [vmem:[%s450_s2 + $0x18] sm:$0xff] }
   0x5   :  { %v268_v10 = vld [vmem:[%s448_s3] ss:$0 sm:$0xff]  ;;  %v259_v38 = vld [vmem:[%s446_s6 + $0x8] sm:$0xff]  ;;  %v117_v41 = vld [vmem:[%s450_s2 + $0x10] sm:$0xff] }
   0x6   :  { %62 = vmatpush.msra.mxu0 %v32_v3  ;;  %147 = vmatpush.msra.mxu1 %v121_v34  ;;  %v119_v39 = vld [vmem:[%s450_s2 + $0x20] sm:$0xff]  ;;  %v116_v42 = vld [vmem:[%s450_s2 + $0x8] sm:$0xff] }
   0x7   :  { %v115_v43 = vld [vmem:[%s450_s2] sm:$0xff] }
   0x8   :  { %63 = vmatpush.msra.mxu0 %v31_v4  ;;  %148 = vmatpush.msra.mxu1 %v120_v35  ;;  %v269_v48 = vld [vmem:[%s448_s3 + $0x1] ss:$0 sm:$0xff] }
   0xa   :  { %64 = vmatpush.msra.mxu0 %v30_v5  ;;  %149 = vmatpush.msra.mxu1 %v119_v39 }
   0xc   :  { %65 = vmatpush.msra.mxu0 %v29_v6  ;;  %150 = vmatpush.msra.mxu1 %v118_v40 }
   0xe   :  { %151 = vmatpush.msra.mxu1 %v117_v41 }
  0x10   :  { %152 = vmatpush.msra.mxu1 %v116_v42 }
  0x12   :  { %153 = vmatpush.msra.mxu1 %v115_v43 }
  0x74   :  { %v39_v8 = vpop.permute.xlu0 %38 }
  0x75   :  { %v42_v9 = vsel %vm41_vm0, %v363_v7, %v39_v8  ;;  %v205_v8 = vld [vmem:[%s452_s4 + $0x18] sm:$0xff] }
  0x76   :  { %256 = vmatmul.msk.f32.vlgmr.msra.gmra.mxu0 %vm46_vm1, %v42_v9  ;;  %v204_v9 = vld [vmem:[%s452_s4 + $0x10] sm:$0xff]  ;;  %224 = vmatpush.msra.mxu2 %v205_v8 }
  0x78   :  { %225 = vmatpush.msra.mxu2 %v204_v9 }
  0xf3   :  { %v67_v11 = vpop.f32.mrf.mxu0 }
  0xf4   :  { %v68_v12 = vadd.f32 %v268_v10, %v67_v11  ;;  %v203_v10 = vld [vmem:[%s452_s4 + $0x8] sm:$0xff]  ;;  %v202_v11 = vld [vmem:[%s452_s4] sm:$0xff]  ;;  %s292_s4 = smov 112  }
  0xf5   :  { %226 = vmatpush.msra.mxu2 %v203_v10 }
  0xf6   :  { %271 = vtanh.f32 %v68_v12  ;;  %v257_v14 = vmul.f32 -1.442695, %v68_v12 }
  0xf7   :  { %227 = vmatpush.msra.mxu2 %v202_v11 }
  0xf8   :  { %273 = vpow2.f32 %v257_v14 }
  0xfc   :  { %v272_v13 = vpop.eup %271 }
  0xfd   :  { %92 = vrot.lane.b32.xlu0 %v272_v13, %s290_s1 }
  0xfe   :  { %v274_v15 = vpop.eup %273 }
  0xff   :  { %v73_v16 = vadd.f32 1.0, %v274_v15 }
 0x101   :  { %275 = vrcp.f32 %v73_v16  ;;  %v85_v22 = vand.u32 2147483648, %v73_v16  ;;  %vm79_vm3 = vweird.f32 %v73_v16  ;;  %v83_v23 = vand.u32 2147483647, %v73_v16 }
 0x103   :  { %v86_v25 = vor.u32 1.1754944e-38, %v85_v22  ;;  %vm84_vm5 = vcmp.eq.f32.partialorder %v83_v23, 8.507059e+37 }
 0x107   :  { %v276_v17 = vpop.eup %275 }
 0x108   :  { %v75_v18 = vmul.f32 %v276_v17, %v73_v16  ;;  %vm80_vm2 = vweird.f32 %v276_v17  ;;  %v270_v16 = vld [vmem:[%s453_s5] ss:$0 sm:$0xff] }
 0x109   :  { %vm81_vm4 = vmor %vm79_vm3, %vm80_vm2 }
 0x10a   :  { %v76_v19 = vsub.f32 1.0, %v75_v18 }
 0x10c   :  { %v77_v20 = vmul.f32 %v276_v17, %v76_v19 }
 0x10e   :  { %v78_v21 = vadd.f32 %v276_v17, %v77_v20 }
 0x110   :  { %v82_v24 = vsel %vm81_vm4, %v276_v17, %v78_v21 }
 0x111   :  { %v87_v27 = vsel %vm84_vm5, %v86_v25, %v82_v24 }
 0x112   :  { %v90_v29 = vmul.f32 %v87_v27, %v36_v0 }
 0x16f   :  { %v93_v26 = vpop.permute.xlu0 %92 }
 0x170   :  { %v95_v28 = vmul.f32 %v93_v26, %v87_v27 }
 0x172   :  { %97 = vrot.lane.b32.xlu1 %v95_v28, %s291_s0 }
 0x1e4   :  { %v98_v30 = vpop.permute.xlu1 %97 }
 0x1e5   :  { %v100_v31 = vadd.f32 %v98_v30, %v90_v29 }
 0x1e7   :  { %277 = vtanh.f32 %v100_v31 }
 0x1ed   :  { %v278_v32 = vpop.eup %277 }
 0x1ee   :  { %103 = vrot.lane.b32.xlu1 %v278_v32, %s290_s1 }
 0x260   :  { %v104_v36 = vpop.permute.xlu1 %103 }
 0x261   :  { %v106_v37 = vmul.f32 %v104_v36, %v87_v27 }
 0x263   :  { %108 = vrot.lane.b32.xlu2 %v106_v37, %s291_s0 }
 0x26b   :  { %128 = vrot.lane.b32.xlu2 %v259_v38, %s291_s0 }
 0x2bd   :  { %v109_v44 = vpop.permute.xlu2 %108 }
 0x2be   :  { %v112_v45 = vsel %vm111_vm6, %v109_v44, %v100_v31 }
 0x2bf   :  { %114 = vst.msk [vmem:[%s451_s8] sm:$0xff] %vm113_vm7, %v112_v45 }
 0x2c5   :  { %v129_v46 = vpop.permute.xlu2 %128 }
 0x2c6   :  { %v131_v47 = vsel %vm111_vm6, %v109_v44, %v129_v46 }
 0x2c7   :  { %260 = vmatmul.msk.f32.vlgmr.msra.gmra.mxu1 %vm113_vm7, %v131_v47 }
 0x344   :  { %v155_v49 = vpop.f32.mrf.mxu1 }
 0x345   :  { %v156_v50 = vadd.f32 %v269_v48, %v155_v49 }
 0x347   :  { %279 = vtanh.f32 %v156_v50  ;;  %v261_v52 = vmul.f32 -1.442695, %v156_v50 }
 0x349   :  { %281 = vpow2.f32 %v261_v52 }
 0x34d   :  { %v280_v51 = vpop.eup %279 }
 0x34e   :  { %180 = vrot.lane.b32.xlu0 %v280_v51, %s290_s1 }
 0x34f   :  { %v282_v53 = vpop.eup %281 }
 0x350   :  { %v161_v54 = vadd.f32 1.0, %v282_v53 }
 0x352   :  { %283 = vrcp.f32 %v161_v54  ;;  %v173_v60 = vand.u32 2147483648, %v161_v54  ;;  %vm167_vm9 = vweird.f32 %v161_v54  ;;  %v171_v61 = vand.u32 2147483647, %v161_v54 }
 0x354   :  { %v174_v63 = vor.u32 1.1754944e-38, %v173_v60  ;;  %vm172_vm11 = vcmp.eq.f32.partialorder %v171_v61, 8.507059e+37 }
 0x358   :  { %v284_v55 = vpop.eup %283 }
 0x359   :  { %v163_v56 = vmul.f32 %v284_v55, %v161_v54  ;;  %vm168_vm8 = vweird.f32 %v284_v55 }
 0x35a   :  { %vm169_vm10 = vmor %vm167_vm9, %vm168_vm8 }
 0x35b   :  { %v164_v57 = vsub.f32 1.0, %v163_v56 }
 0x35d   :  { %v165_v58 = vmul.f32 %v284_v55, %v164_v57 }
 0x35f   :  { %v166_v59 = vadd.f32 %v284_v55, %v165_v58 }
 0x361   :  { %v170_v62 = vsel %vm169_vm10, %v284_v55, %v166_v59 }
 0x362   :  { %v175_v1 = vsel %vm172_vm11, %v174_v63, %v170_v62 }
 0x363   :  { %v178_v3 = vmul.f32 %v259_v38, %v175_v1 }
 0x3c0   :  { %v181_v0 = vpop.permute.xlu0 %180 }
 0x3c1   :  { %v183_v2 = vmul.f32 %v181_v0, %v175_v1 }
 0x3c3   :  { %185 = vrot.lane.b32.xlu1 %v183_v2, %s291_s0 }
 0x435   :  { %v186_v4 = vpop.permute.xlu1 %185 }
 0x436   :  { %v188_v5 = vadd.f32 %v186_v4, %v178_v3 }
 0x438   :  { %285 = vtanh.f32 %v188_v5 }
 0x43e   :  { %v286_v6 = vpop.eup %285 }
 0x43f   :  { %191 = vrot.lane.b32.xlu2 %v286_v6, %s290_s1 }
 0x499   :  { %v192_v12 = vpop.permute.xlu2 %191 }
 0x49a   :  { %v194_v13 = vmul.f32 %v192_v12, %v175_v1 }
 0x49c   :  { %196 = vrot.lane.b32.xlu0 %v194_v13, %s291_s0 }
 0x50e   :  { %v197_v14 = vpop.permute.xlu0 %196 }
 0x50f   :  { %v199_v15 = vsel %vm111_vm6, %v197_v14, %v188_v5  ;;  %263 = vmatmul.msk.f32.vlgmr.msra.gmra.mxu2 %vm111_vm6, %v197_v14 }
 0x510   :  { %262 = vst.msk [vmem:[%s451_s8 + $0x8] sm:$0xff] %vm113_vm7, %v199_v15 }
 0x592   :  { %v229_v17 = vpop.f32.mrf.mxu2 }
 0x593   :  { %v230_v18 = vadd.f32 %v270_v16, %v229_v17 }
 0x595   :  { %237 = vrot.lane.b32.xlu1 %v230_v18, %s289_s11  ;;  %v232_v19 = vmul.f32 0.5, %v230_v18 }
 0x597   :  { %v233_v20 = vmul.f32 1.442695, %v232_v19 }
 0x599   :  { %287 = vpow2.f32 %v233_v20 }
 0x59f   :  { %v288_v21 = vpop.eup %287 }
 0x5a0   :  { %v235_v22 = vmul.f32 %v288_v21, %v363_v7 }
 0x607   :  { %v238_v23 = vpop.permute.xlu1 %237 }
 0x608   :  { %v240_v24 = vadd.f32 %v238_v23, %v235_v22 }
 0x60a   :  { %242 = vrot.lane.b32.xlu2 %v240_v24, %s292_s4 }
 0x664   :  { %v243_v25 = vpop.permute.xlu2 %242 }
 0x665   :  { %v245_v26 = vsel %vm41_vm0, %v243_v25, %v238_v23 }
 0x666   :  { %v246_v27 = vsel %vm111_vm6, %v245_v26, %v238_v23 }
 0x667   :  { %247 = vst.msk [vmem:[%s454_s7] sm:$0xff] %vm46_vm1, %v246_v27 }

</bundles_post_ra>
